<compile_context>
chip_gen: v5e
topology: v5e:2x2
jax: 0.10.0
libtpu: 0.0.40
codegen_flags: <defaults>
</compile_context>

<pallas_src>
import functools

import jax
import jax.numpy as jnp
from jax import lax
from jax.experimental import pallas as pl
from jax.experimental.pallas import tpu as pltpu


def _pooling_kernel(*refs, inv_tau: float, hard: bool, has_noise: bool):
    if has_noise:
        states_ref, noise_ref, wconf_ref, wlog_ref, blog_ref, out_ref = refs
    else:
        states_ref, wconf_ref, wlog_ref, blog_ref, out_ref = refs
        noise_ref = None

    states = states_ref[...]                                   # [TB, U, C] native dtype

    # --- confidence scorer: Linear(C,1) as VPU multiply + lane reduce ---------
    # Multiply in the native dtype (bf16 stays bf16), accumulate in f32 over C.
    # b_conf is intentionally dropped: softmax is shift-invariant, so a shared
    # per-row additive constant never changes the output.
    conf = jnp.sum(states * wconf_ref[...], axis=-1, dtype=jnp.float32)   # [TB, U]

    # --- (gumbel) softmax over U ----------------------------------------------
    if has_noise:
        z = (conf + noise_ref[...]) * inv_tau
    else:
        z = conf * inv_tau                                      # 'vanilla'
    m = jnp.max(z, axis=-1, keepdims=True)                      # [TB, 1]

    if hard:
        # gumbel-hard forward value: one-hot at the first argmax over U.
        col = lax.broadcasted_iota(jnp.int32, z.shape, 1)       # [TB, U]
        big = jnp.int32(z.shape[-1])
        first = jnp.min(jnp.where(z == m, col, big), axis=-1, keepdims=True)
        weights = (col == first).astype(states.dtype)           # [TB, U] one-hot
        pooled = jnp.sum(states * weights[:, :, None], axis=1,
                         dtype=jnp.float32)                     # [TB, C] f32
    else:
        e = jnp.exp(z - m)                                      # [TB, U] f32, in (0,1]
        denom = jnp.sum(e, axis=-1, keepdims=True)              # [TB, 1]
        # pooling contraction over U on the VPU/XLU (multiply + sublane reduce);
        # a batched M=1 dot_general would serialize into TB tiny MXU pushes.
        pooled = jnp.sum(states * e.astype(states.dtype)[:, :, None], axis=1,
                         dtype=jnp.float32)                     # [TB, C] f32
        # normalize after pooling: EUP reciprocal + one Newton step (~f32 exact)
        inv = pl.reciprocal(denom, approx=True)
        inv = inv * (2.0 - denom * inv)
        pooled = pooled * inv

    # --- to_logits: Linear(C, D_pad) on the MXU (lane-dense output) -----------
    logits = jnp.dot(pooled.astype(wlog_ref.dtype), wlog_ref[...],
                     preferred_element_type=jnp.float32)        # [TB, D_pad]
    logits = logits + blog_ref[...]
    out_ref[...] = logits.astype(out_ref.dtype)


def output_latent_pooling(states, w_conf, b_conf, w_logits, b_logits, *,
                          softmax_type: str = "gumbel",
                          softmax_temperature: float = 1.0,
                          noise_key=None):
    """Pallas implementation of OutputLatentPooling.forward.

    states:   [B, U, C]
    w_conf:   [C, 1]    (torch Linear(C,1).weight.T)
    b_conf:   scalar / [1] / [1, 1]   -- accepted for API parity; has no effect
                                         (softmax is shift-invariant)
    w_logits: [C, D]    (torch Linear(C,D).weight.T)
    b_logits: [D] / [1, D]
    """
    B, U, C = states.shape
    w_conf = jnp.asarray(w_conf)
    assert w_conf.shape == (C, 1), f"w_conf must be [C,1], got {w_conf.shape}"
    D = w_logits.shape[-1]
    assert w_logits.shape == (C, D)
    del b_conf  # provably a no-op on the forward output (softmax shift-invariance)

    w_conf_row = jnp.asarray(w_conf, states.dtype).reshape(1, C)
    b_logits_row = jnp.asarray(b_logits, w_logits.dtype).reshape(1, D)

    # Lane-dense output: pad D up to a multiple of 128, slice outside.
    LANE = 128
    D_pad = max(LANE, ((D + LANE - 1) // LANE) * LANE)
    if D_pad != D:
        w_logits_p = jnp.zeros((C, D_pad), w_logits.dtype).at[:, :D].set(w_logits)
        b_logits_p = jnp.zeros((1, D_pad), w_logits.dtype).at[:, :D].set(b_logits_row)
    else:
        w_logits_p, b_logits_p = w_logits, b_logits_row

    # Noise handling (sampled in plain JAX for 'gumbel*' to bit-match reference).
    hard = False
    if softmax_type in ("gumbel", "gumbel-hard"):
        assert noise_key is not None, "gumbel softmax needs noise_key"
        noise = jax.random.gumbel(noise_key, (B, U), dtype=jnp.float32)
        hard = (softmax_type == "gumbel-hard")
        has_noise = True
    elif softmax_type == "vanilla":
        noise = None
        has_noise = False
    else:
        raise NotImplementedError(f"Unknown softmax type: {softmax_type}")

    # --- generation-aware VMEM budget & batch tile ----------------------------
    try:
        phys_vmem = int(pltpu.get_tpu_info().vmem_capacity_bytes)
    except Exception:
        phys_vmem = 64 << 20                      # conservative: v7x per-TC VMEM
    vmem_limit = min(phys_vmem * 3 // 4, 96 << 20)       # 48 MiB v7x, 96 MiB v5e/v6e
    target_bytes = max(1 << 20, vmem_limit // 8)          # per states buffer

    bytes_per_row = U * C * states.dtype.itemsize
    TB = max(1, min(B, target_bytes // max(1, bytes_per_row)))
    if TB >= B:
        TB = B                                    # single full-batch block allowed
    else:
        TB = max(8, (TB // 8) * 8)                # multiple of 8 (output sublane dim)
    # Ensure >= 2 grid blocks when B is large enough: lets the "parallel" batch
    # axis shard across both TensorCores on v7x (harmless on v5e/v6e).
    if B >= 16:
        TB = min(TB, max(8, ((pl.cdiv(B, 2) + 7) // 8) * 8))
    num_blocks = pl.cdiv(B, TB)
    # NOTE: no jnp.pad — the tail block (when TB does not divide B) relies on
    # Pallas bounds masking; rows are fully independent, OOB outputs are dropped.
    # TODO(synk): U-axis online-softmax blocking for very large U*C (see header).

    kernel = functools.partial(
        _pooling_kernel,
        inv_tau=float(1.0 / softmax_temperature),
        hard=hard,
        has_noise=has_noise,
    )

    states_spec = pl.BlockSpec((TB, U, C), lambda b: (b, 0, 0))
    noise_spec = pl.BlockSpec((TB, U), lambda b: (b, 0))
    wc_spec = pl.BlockSpec((1, C), lambda b: (0, 0))
    wl_spec = pl.BlockSpec((C, D_pad), lambda b: (0, 0))
    bl_spec = pl.BlockSpec((1, D_pad), lambda b: (0, 0))
    out_spec = pl.BlockSpec((TB, D_pad), lambda b: (b, 0))

    in_specs = [states_spec]
    args = [states]
    if has_noise:
        in_specs.append(noise_spec)
        args.append(noise)
    in_specs += [wc_spec, wl_spec, bl_spec]
    args += [w_conf_row, w_logits_p, b_logits_p]

    itemsize = states.dtype.itemsize
    cost = pl.CostEstimate(
        flops=4 * B * U * C + 2 * B * C * D_pad,
        transcendentals=B * U,
        bytes_accessed=(B * U * C * itemsize
                        + (B * U * 4 if has_noise else 0)
                        + C * D_pad * w_logits_p.dtype.itemsize
                        + D_pad * w_logits_p.dtype.itemsize
                        + C * itemsize
                        + B * D_pad * itemsize),
    )

    out = pl.pallas_call(
        kernel,
        out_shape=jax.ShapeDtypeStruct((B, D_pad), states.dtype),
        grid=(num_blocks,),
        in_specs=in_specs,
        out_specs=out_spec,
        compiler_params=pltpu.CompilerParams(
            dimension_semantics=("parallel",),
            vmem_limit_bytes=int(vmem_limit),
        ),
        cost_estimate=cost,
    )(*args)

    return out[:, :D] if D_pad != D else out


def _reference(states, w_conf, b_conf, w_logits, b_logits, noise, tau, hard=False):
    conf = jnp.einsum("buc,co->buo", states, w_conf)[..., 0] + jnp.reshape(b_conf, ())
    z = (conf + noise) / tau
    if hard:
        w = jax.nn.one_hot(jnp.argmax(z, axis=-1), z.shape[-1], dtype=states.dtype)
    else:
        w = jax.nn.softmax(z, axis=-1)
    selected = jnp.einsum("buc,bu->bc", states, w)
    return selected @ w_logits + jnp.reshape(b_logits, (1, -1))


if __name__ == "__main__":
    # Small shapes consistent with the module: seq(units)=8, state_dim=32,
    # output_dim=16; batch=2 (single-block) and batch=20 (non-divisible grid).
    U, C, D = 8, 32, 16
    tau = 0.7

    root = jax.random.PRNGKey(0)
    k_states, k_wc, k_bc, k_wl, k_bl, k_n1, k_s2, k_n2 = jax.random.split(root, 8)

    w_conf = jax.random.normal(k_wc, (C, 1), dtype=jnp.float32) * 0.1
    b_conf = jax.random.normal(k_bc, (1, 1), dtype=jnp.float32) * 0.1
    w_logits = jax.random.normal(k_wl, (C, D), dtype=jnp.float32) * 0.1
    b_logits = jax.random.normal(k_bl, (1, D), dtype=jnp.float32) * 0.1

    # --- gumbel (soft), small batch ------------------------------------------
    B = 2
    states = jax.random.normal(k_states, (B, U, C), dtype=jnp.float32)
    noise = jax.random.gumbel(k_n1, (B, U), dtype=jnp.float32)
    out = jax.block_until_ready(output_latent_pooling(
        states, w_conf, b_conf, w_logits, b_logits,
        softmax_type="gumbel", softmax_temperature=tau, noise_key=k_n1))
    ref = _reference(states, w_conf, b_conf, w_logits, b_logits, noise, tau)
    assert out.shape == (B, D)
    assert jnp.allclose(out, ref, atol=1e-4, rtol=1e-4), "gumbel mismatch"

    # --- vanilla (no noise operand at all) ------------------------------------
    out_v = jax.block_until_ready(output_latent_pooling(
        states, w_conf, b_conf, w_logits, b_logits,
        softmax_type="vanilla", softmax_temperature=tau))
    ref_v = _reference(states, w_conf, b_conf, w_logits, b_logits,
                       jnp.zeros((B, U), jnp.float32), tau)
    assert jnp.allclose(out_v, ref_v, atol=1e-4, rtol=1e-4), "vanilla mismatch"

    # --- gumbel-hard (forward value = one-hot at argmax) ----------------------
    out_h = jax.block_until_ready(output_latent_pooling(
        states, w_conf, b_conf, w_logits, b_logits,
        softmax_type="gumbel-hard", softmax_temperature=tau, noise_key=k_n1))
    ref_h = _reference(states, w_conf, b_conf, w_logits, b_logits, noise, tau,
                       hard=True)
    assert jnp.allclose(out_h, ref_h, atol=1e-4, rtol=1e-4), "gumbel-hard mismatch"

    # --- batch that does not divide the tile (masked tail block, 2 grid blocks)
    B2 = 20
    states2 = jax.random.normal(k_s2, (B2, U, C), dtype=jnp.float32)
    noise2 = jax.random.gumbel(k_n2, (B2, U), dtype=jnp.float32)
    out2 = jax.block_until_ready(output_latent_pooling(
        states2, w_conf, b_conf, w_logits, b_logits,
        softmax_type="gumbel", softmax_temperature=tau, noise_key=k_n2))
    ref2 = _reference(states2, w_conf, b_conf, w_logits, b_logits, noise2, tau)
    assert out2.shape == (B2, D)
    assert jnp.allclose(out2, ref2, atol=1e-4, rtol=1e-4), "tail-block mismatch"

    print("KERNEL_OK")
</pallas_src>

<mosaic_0001>
module attributes {stable_mosaic.version = 11 : i64} {
  func.func @_pooling_kernel(%arg0: i32, %arg1: memref<2x8x32xf32, #tpu.memory_space<vmem>>, %arg2: memref<2x8xf32, #tpu.memory_space<vmem>>, %arg3: memref<1x32xf32, #tpu.memory_space<vmem>>, %arg4: memref<32x128xf32, #tpu.memory_space<vmem>>, %arg5: memref<1x128xf32, #tpu.memory_space<vmem>>, %arg6: memref<2x128xf32, #tpu.memory_space<vmem>>) attributes {dimension_semantics = [#tpu.dimension_semantics<parallel>], iteration_bounds = array<i64: 1>, scalar_prefetch = 0 : i64, scratch_operands = 0 : i64, tpu.core_type = #tpu.core_type<tc>, window_params = [{transform_indices = @transform_0, window_bounds = array<i64: 2, 8, 32>}, {transform_indices = @transform_1, window_bounds = array<i64: 2, 8>}, {pipeline_mode = #tpu.pipeline_mode<synchronous>, transform_indices = @transform_2, window_bounds = array<i64: 1, 32>}, {pipeline_mode = #tpu.pipeline_mode<synchronous>, transform_indices = @transform_3, window_bounds = array<i64: 32, 128>}, {pipeline_mode = #tpu.pipeline_mode<synchronous>, transform_indices = @transform_4, window_bounds = array<i64: 1, 128>}, {transform_indices = @transform_5, window_bounds = array<i64: 2, 128>}]} {
    %c0 = arith.constant 0 : index
    %c0_0 = arith.constant 0 : index
    %c0_1 = arith.constant 0 : index
    %0 = vector.load %arg1[%c0, %c0_0, %c0_1] : memref<2x8x32xf32, #tpu.memory_space<vmem>>, vector<2x8x32xf32>
    %c0_2 = arith.constant 0 : index
    %c0_3 = arith.constant 0 : index
    %1 = vector.load %arg3[%c0_2, %c0_3] : memref<1x32xf32, #tpu.memory_space<vmem>>, vector<1x32xf32>
    %2 = vector.shape_cast %1 : vector<1x32xf32> to vector<1x1x32xf32>
    %3 = vector.broadcast %2 : vector<1x1x32xf32> to vector<2x8x32xf32>
    %4 = arith.mulf %0, %3 : vector<2x8x32xf32>
    %cst = arith.constant dense<0.000000e+00> : vector<2x8xf32>
    %5 = vector.multi_reduction <add>, %4, %cst [2] : vector<2x8x32xf32> to vector<2x8xf32>
    %c0_4 = arith.constant 0 : index
    %c0_5 = arith.constant 0 : index
    %6 = vector.load %arg2[%c0_4, %c0_5] : memref<2x8xf32, #tpu.memory_space<vmem>>, vector<2x8xf32>
    %7 = arith.addf %5, %6 : vector<2x8xf32>
    %cst_6 = arith.constant 1.42857146 : f32
    %8 = vector.broadcast %cst_6 : f32 to vector<2x8xf32>
    %9 = arith.mulf %7, %8 : vector<2x8xf32>
    %cst_7 = arith.constant dense<0xFF800000> : vector<2xf32>
    %10 = vector.multi_reduction <maximumf>, %9, %cst_7 [1] : vector<2x8xf32> to vector<2xf32>
    %11 = vector.shape_cast %10 : vector<2xf32> to vector<2x1xf32>
    %12 = vector.broadcast %11 : vector<2x1xf32> to vector<2x8xf32>
    %13 = arith.subf %9, %12 : vector<2x8xf32>
    %14 = math.exp %13 : vector<2x8xf32>
    %cst_8 = arith.constant dense<0.000000e+00> : vector<2xf32>
    %15 = vector.multi_reduction <add>, %14, %cst_8 [1] : vector<2x8xf32> to vector<2xf32>
    %16 = vector.shape_cast %15 : vector<2xf32> to vector<2x1xf32>
    %17 = vector.shape_cast %14 : vector<2x8xf32> to vector<2x8x1xf32>
    %18 = vector.broadcast %17 : vector<2x8x1xf32> to vector<2x8x32xf32>
    %19 = arith.mulf %0, %18 : vector<2x8x32xf32>
    %cst_9 = arith.constant dense<0.000000e+00> : vector<2x32xf32>
    %20 = vector.multi_reduction <add>, %19, %cst_9 [1] : vector<2x8x32xf32> to vector<2x32xf32>
    %21 = tpu.reciprocal %16 {approx = true} : vector<2x1xf32> -> vector<2x1xf32>
    %22 = arith.mulf %16, %21 : vector<2x1xf32>
    %cst_10 = arith.constant 2.000000e+00 : f32
    %23 = vector.broadcast %cst_10 : f32 to vector<2x1xf32>
    %24 = arith.subf %23, %22 : vector<2x1xf32>
    %25 = arith.mulf %21, %24 : vector<2x1xf32>
    %26 = vector.broadcast %25 : vector<2x1xf32> to vector<2x32xf32>
    %27 = arith.mulf %20, %26 : vector<2x32xf32>
    %c0_11 = arith.constant 0 : index
    %c0_12 = arith.constant 0 : index
    %28 = vector.load %arg4[%c0_11, %c0_12] : memref<32x128xf32, #tpu.memory_space<vmem>>, vector<32x128xf32>
    %cst_13 = arith.constant dense<0.000000e+00> : vector<2x128xf32>
    %29 = tpu.matmul %27, %28, %cst_13 {dimension_numbers = #tpu.dot_dimension_numbers<[1], [0], [0], [1], [0, 0, 1, 1], [], []>} : vector<2x32xf32>, vector<32x128xf32>, vector<2x128xf32> -> vector<2x128xf32>
    %c0_14 = arith.constant 0 : index
    %c0_15 = arith.constant 0 : index
    %30 = vector.load %arg5[%c0_14, %c0_15] : memref<1x128xf32, #tpu.memory_space<vmem>>, vector<1x128xf32>
    %31 = vector.broadcast %30 : vector<1x128xf32> to vector<2x128xf32>
    %32 = arith.addf %29, %31 : vector<2x128xf32>
    %c0_16 = arith.constant 0 : index
    %c0_17 = arith.constant 0 : index
    %33 = vector.load %arg6[%c0_16, %c0_17] : memref<2x128xf32, #tpu.memory_space<vmem>>, vector<2x128xf32>
    tpu.vector_store %arg6[%c0_16, %c0_17], %32 {strides = array<i32>} : memref<2x128xf32, #tpu.memory_space<vmem>>, vector<2x128xf32>,
    return
  }
  func.func @transform_0(%arg0: i32) -> (i32, i32, i32) {
    %c0_i32 = arith.constant 0 : i32
    %c0_i32_0 = arith.constant 0 : i32
    %c0_i32_1 = arith.constant 0 : i32
    return %arg0, %c0_i32, %c0_i32_0 : i32, i32, i32
  }
  func.func @transform_1(%arg0: i32) -> (i32, i32) {
    %c0_i32 = arith.constant 0 : i32
    %c0_i32_0 = arith.constant 0 : i32
    return %arg0, %c0_i32 : i32, i32
  }
  func.func @transform_2(%arg0: i32) -> (i32, i32) {
    %c0_i32 = arith.constant 0 : i32
    %c0_i32_0 = arith.constant 0 : i32
    %c0_i32_1 = arith.constant 0 : i32
    return %c0_i32, %c0_i32_0 : i32, i32
  }
  func.func @transform_3(%arg0: i32) -> (i32, i32) {
    %c0_i32 = arith.constant 0 : i32
    %c0_i32_0 = arith.constant 0 : i32
    %c0_i32_1 = arith.constant 0 : i32
    return %c0_i32, %c0_i32_0 : i32, i32
  }
  func.func @transform_4(%arg0: i32) -> (i32, i32) {
    %c0_i32 = arith.constant 0 : i32
    %c0_i32_0 = arith.constant 0 : i32
    %c0_i32_1 = arith.constant 0 : i32
    return %c0_i32, %c0_i32_0 : i32, i32
  }
  func.func @transform_5(%arg0: i32) -> (i32, i32) {
    %c0_i32 = arith.constant 0 : i32
    %c0_i32_0 = arith.constant 0 : i32
    return %arg0, %c0_i32 : i32, i32
  }
}

</mosaic_0001>

<bundles_post_ra>
// kernel: tpu_custom_call.1
= control target key start
LH: loop header
LB: loop body
LE: loop exit
PB: predicated region body
PF: predicated region fallthrough
CT: control target
= control target key end

     0   :  { %10 = vsyncpa [#allocation3], 0  ;;  %s420_s0 = inlined_call_operand.hbm [shape: f32[2,8,32], index: 0, kind: input, shape index: {}]   ;;  %s421_s1 = inlined_call_operand.hbm [shape: f32[2,8], index: 1, kind: input, shape index: {}]   ;;  %s422_s2 = inlined_call_operand.vmem [shape: f32[1,32], index: 2, kind: input, shape index: {}]   ;;  %s423_s3 = inlined_call_operand.hbm [shape: f32[32,128], index: 3, kind: input, shape index: {}]   ;;  %s424_s4 = inlined_call_operand.vmem [shape: f32[1,128], index: 4, kind: input, shape index: {}]   ;;  %s425_s5 = inlined_call_operand.hbm [shape: f32[2,128], index: 5, kind: output, shape index: {}]  }
   0x1   :  { %11 = vsyncpa [#allocation6], 0  ;;  %s31_s20 = sshll.u32 %s421_s1, 4  ;;  %s32_s20 = int_to_ptr.hbm [resolvable:$true] %s31_s20 }
   0x2   :  { %12 = vsyncpa [#allocation4], 0  ;;  %s351_s21 = smov [#allocation5]   ;;  %s17_s25 = sshll.u32 %s420_s0, 4  ;;  %s18_s25 = int_to_ptr.hbm [resolvable:$true] %s17_s25 }
   0x3   :  { %s33_s22 = sshll.u32 %s351_s21, 4  ;;  %s352_s26 = smov [#allocation2]   ;;  %s34_s22 = int_to_ptr.vmem [resolvable:$true] %s33_s22 }
   0x4   :  { %36 = dma.hbm_to_vmem [thread:$0]  %s32_s20, 32, %s34_s22, [#allocation6]  }
   0x5   :  { %s19_s27 = sshll.u32 %s352_s26, 4  ;;  %s353_s28 = smov 128   ;;  %s20_s27 = int_to_ptr.vmem [resolvable:$true] %s19_s27 }
   0x6   :  { %s354_s29 = smov 8   ;;  %s43_s1 = sshll.u32 %s423_s3, 4  ;;  %s44_s1 = int_to_ptr.hbm [resolvable:$true] %s43_s1 }
   0x7   :  { %25 = dma.hbm_to_vmem [thread:$0]  %s18_s25, 256, %s20_s27, [#allocation3], %s353_s28, %s353_s28, %s354_s29  }
   0x8   :  { %s355_s7 = smov [#allocation7]  }
   0x9   :  { %s45_s8 = sshll.u32 %s355_s7, 4  ;;  %s46_s8 = int_to_ptr.vmem [resolvable:$true] %s45_s8 }
   0xa   :  { %51 = dma.hbm_to_vmem [thread:$0]  %s44_s1, 512, %s46_s8, [#allocation6], %s353_s28, %s353_s28, %s354_s29  }
   0xb   :  { %345 = dma.done.wait [#allocation3], 256  }
   0xc   :  { %346 = vsyncadd [#allocation3], 4294967040 }
   0xd   :  { %347 = dma.done.wait [#allocation6], 544  }
   0xe   :  { %348 = vsyncadd [#allocation6], 4294966752  ;;  %v84_v0 = vlaneseq  ;;  %v81_v2 = vld [vmem:[#allocation5] sm:$0x3]  ;;  %v397_v3 = vld [vmem:[#allocation2] sm:$0xff]  ;;  %vm74_vm0 = vcmask 261120  }
   0xf   :  { %v83_v4 = vperm.slane %v81_v2, 0  ;;  %v241_v5 = vld [vmem:[%s422_s2] ss:$0 sm:$0xff]  ;;  %v67_v7 = vld [vmem:[#allocation2 + $0x8] sm:$0xff]  ;;  %v90_v10 = vperm.slane %v81_v2, 1  ;;  %v356_v12 = vmov 0  }
  0x10   :  { %v85_v1 = vshrl.u32 %v84_v0, 7  ;;  %v72_v6 = vmul.f32 %v241_v5, %v397_v3  ;;  %v73_v9 = vmul.f32 %v241_v5, %v67_v7  ;;  %238 = vset.pattern.permute.xlu2 %v356_v12  ;;  %240 = vset.pattern.permute.xlu0 %v356_v12  ;;  %v112_v22 = vand.u32 127, %v84_v0  ;;  %v179_v43 = vld [vmem:[#allocation7 + $0x18] sm:$0xff]  ;;  %v178_v44 = vld [vmem:[#allocation7 + $0x10] sm:$0xff]  ;;  %v177_v45 = vld [vmem:[#allocation7 + $0x8] sm:$0xff]  ;;  %s357_s10 = smov [#allocation8]  }
  0x11   :  { %vm115_vm1 = vcmask 1041409   ;;  %vm118_vm2 = vcmask 58368   ;;  %202 = vmatpush.msra.mxu0 %v179_v43  ;;  %v176_v46 = vld [vmem:[#allocation7] sm:$0xff]  ;;  %s216_s11 = sshll.u32 %s357_s10, 4  ;;  %s218_s14 = sshll.u32 %s425_s5, 4  ;;  %s217_s11 = int_to_ptr.vmem [resolvable:$true] %s216_s11  ;;  %s219_s14 = int_to_ptr.hbm [resolvable:$true] %s218_s14 }
  0x12   :  { %237 = vset.pattern.permute.xlu1 %v85_v1  ;;  %v75_v8 = vsel %vm74_vm0, %v72_v6, 0.0  ;;  %v78_v11 = vsel %vm74_vm0, %v73_v9, 0.0  ;;  %v242_v9 = vld [vmem:[%s424_s4] ss:$0 sm:$0xff] }
  0x13   :  { %76 = vadd.xlane.f32.xlu0 %v75_v8  ;;  %203 = vmatpush.msra.mxu0 %v178_v44 }
  0x15   :  { %204 = vmatpush.msra.mxu0 %v177_v45 }
  0x17   :  { %205 = vmatpush.msra.mxu0 %v176_v46 }
  0x1a   :  { %88 = vperm.xlu1 %237, %v83_v4  }
  0x1b   :  { %79 = vadd.xlane.f32.xlu0 %v78_v11 }
  0x22   :  { %95 = vperm.xlu1 %237, %v90_v10  }
  0x2a   :  { %239 = vset.pattern.permute.xlu1 %v356_v12 }
  0x86   :  { %v77_v14 = vpop.xlane.xlu0 %76 }
  0x8c   :  { %v89_v13 = vpop.permute.xlu1 %88 }
  0x8d   :  { %v99_v15 = vadd.f32 %v89_v13, %v77_v14 }
  0x8e   :  { %v80_v18 = vpop.xlane.xlu0 %79 }
  0x8f   :  { %v101_v16 = vmul.f32 1.4285715, %v99_v15 }
  0x91   :  { %106 = vperm.xlu2 %238, %v101_v16  }
  0x94   :  { %v96_v17 = vpop.permute.xlu1 %95 }
  0x95   :  { %v100_v19 = vadd.f32 %v96_v17, %v80_v18 }
  0x97   :  { %v102_v20 = vmul.f32 1.4285715, %v100_v19 }
  0x99   :  { %109 = vperm.xlu2 %238, %v102_v20  }
  0xeb   :  { %v107_v21 = vpop.permute.xlu2 %106 }
  0xec   :  { %v113_v24 = vperm.slane %v107_v21, %v112_v22 }
  0xf3   :  { %v110_v23 = vpop.permute.xlu2 %109 }
  0xf4   :  { %v114_v25 = vperm.slane %v110_v23, %v112_v22 }
  0xf6   :  { %v116_v26 = vsel %vm115_vm1, %v114_v25, %v113_v24 }
  0xf7   :  { %v119_v27 = vsel %vm118_vm2, %v116_v26, -inf }
  0xf8   :  { %120 = vmax.xlane.f32.xlu0 %v119_v27 }
 0x16b   :  { %v121_v28 = vpop.xlane.xlu0 %120 }
 0x16c   :  { %v123_v29 = vperm.slane %v121_v28, 0  ;;  %v124_v30 = vperm.slane %v121_v28, 1 }
 0x16e   :  { %v127_v31 = vsub.f32 %v101_v16, %v123_v29  ;;  %v128_v32 = vsub.f32 %v102_v20, %v124_v30 }
 0x170   :  { %v129_v33 = vmul.f32 1.442695, %v127_v31  ;;  %v131_v34 = vmul.f32 1.442695, %v128_v32 }
 0x172   :  { %243 = vpow2.f32 %v129_v33 }
 0x173   :  { %245 = vpow2.f32 %v131_v34 }
 0x178   :  { %v244_v35 = vpop.eup %243 }
 0x179   :  { %v246_v36 = vpop.eup %245  ;;  %136 = vperm.xlu1 %239, %v244_v35  }
 0x17a   :  { %139 = vperm.xlu2 %238, %v246_v36  }
 0x1d4   :  { %v140_v37 = vpop.permute.xlu2 %139 }
 0x1d5   :  { %v142_v39 = vperm.slane %v140_v37, %v112_v22  ;;  %v151_v47 = vmul.f32 %v140_v37, %v67_v7 }
 0x1d7   :  { %v159_v49 = vsel %vm74_vm0, %v151_v47, 0.0 }
 0x1d8   :  { %v160_v51 = vrot.slane %v159_v49, 4 }
 0x1da   :  { %v161_v53 = vadd.f32 %v160_v51, %v159_v49 }
 0x1dc   :  { %v162_v56 = vrot.slane %v161_v53, 2 }
 0x1de   :  { %v163_v58 = vadd.f32 %v162_v56, %v161_v53 }
 0x1e0   :  { %v164_v62 = vrot.slane %v163_v58, 1 }
 0x1e2   :  { %v165_v2 = vadd.f32 %v164_v62, %v163_v58 }
 0x1eb   :  { %v137_v38 = vpop.permute.xlu1 %136 }
 0x1ec   :  { %v141_v40 = vperm.slane %v137_v38, %v112_v22  ;;  %v150_v48 = vmul.f32 %v137_v38, %v397_v3 }
 0x1ee   :  { %v143_v41 = vsel %vm115_vm1, %v142_v39, %v141_v40  ;;  %v152_v50 = vsel %vm74_vm0, %v150_v48, 0.0 }
 0x1ef   :  { %v145_v42 = vsel %vm118_vm2, %v143_v41, 0.0  ;;  %v153_v52 = vrot.slane %v152_v50, 4 }
 0x1f0   :  { %146 = vadd.xlane.f32.xlu0 %v145_v42 }
 0x1f1   :  { %v154_v54 = vadd.f32 %v153_v52, %v152_v50 }
 0x1f3   :  { %v155_v57 = vrot.slane %v154_v54, 2 }
 0x1f5   :  { %v156_v60 = vadd.f32 %v155_v57, %v154_v54 }
 0x1f7   :  { %v157_v0 = vrot.slane %v156_v60, 1 }
 0x1f9   :  { %v158_v4 = vadd.f32 %v157_v0, %v156_v60 }
 0x263   :  { %v147_v55 = vpop.xlane.xlu0 %146 }
 0x264   :  { %247 = vrcp.f32 %v147_v55 }
 0x26a   :  { %v248_v59 = vpop.eup %247 }
 0x26b   :  { %v167_v61 = vmul.f32 %v248_v59, %v147_v55 }
 0x26d   :  { %v168_v63 = vsub.f32 2.0, %v167_v61 }
 0x26f   :  { %v169_v1 = vmul.f32 %v248_v59, %v168_v63 }
 0x271   :  { %v171_v3 = vrot.slane %v169_v1, 1  ;;  %v174_v6 = vmul.f32 %v169_v1, %v158_v4 }
 0x273   :  { %v175_v5 = vmul.f32 %v171_v3, %v165_v2 }
 0x275   :  { %v186_v7 = vrot.slane %v175_v5, 7 }
 0x277   :  { %v187_v8 = vsel %vm115_vm1, %v186_v7, %v174_v6 }
 0x278   :  { %229 = vmatmul.msk.f32.vlgmr.msra.gmra.mxu0 %vm74_vm0, %v187_v8 }
 0x2f5   :  { %v207_v10 = vpop.f32.mrf.mxu0 }
 0x2f6   :  { %v208_v11 = vadd.f32 %v242_v9, %v207_v10 }
 0x2f8   :  { %210 = vst [vmem:[#allocation8] sm:$0x3] %v208_v11 }
 0x2f9   :  { %221 = dma.vmem_to_hbm [thread:$0]  %s217_s11, 32, %s219_s14, [#allocation4]  }
 0x2fa   :  { %349 = dma.done.wait [#allocation4], 32  }
 0x2fb   :  { %350 = vsyncadd [#allocation4], 4294967264 }
 0x2fc   :  { %226 = vsyncpa [#allocation3], 1 }
 0x2fd   :  { %227 = vsyncpa [#allocation6], 1 }
 0x2fe   :  { %228 = vsyncpa [#allocation4], 1 }

</bundles_post_ra>
